<compile_context>
chip_gen: v6e
topology: v6e:2x2x1
jax: 0.10.0
libtpu: 0.0.40
codegen_flags: <defaults>
</compile_context>

<pallas_src>
import jax
import jax.numpy as jnp
from jax.experimental import pallas as pl
from jax.experimental.pallas import tpu as pltpu

LANE = 128
SUB = 8


def _round_up(n, m):
    return ((n + m - 1) // m) * m


def controlnet_kernel(x_ref, w1_ref, b1_ref, w2_ref, b2_ref, w3_ref, b3_ref, o_ref):
    x = x_ref[...]                                   # (tb, n_input) f32, raw lanes (no HBM pad)
    tb, n_in = x.shape
    in_pad = w1_ref.shape[0]
    n_out = o_ref.shape[1]

    # Lane-pad the narrow input inside VMEM (bf16) so layer 1 is a full MXU tile.
    xb = x.astype(jnp.bfloat16)
    if in_pad > n_in:                                # static (trace-time) decision
        xb = jnp.concatenate(
            [xb, jnp.zeros((tb, in_pad - n_in), jnp.bfloat16)], axis=-1)

    # layer1 + ReLU (bf16 MXU inputs, f32 accumulate / elementwise)
    h1 = jnp.dot(xb, w1_ref[...], preferred_element_type=jnp.float32) + b1_ref[...]
    h1 = jnp.maximum(h1, 0.0)

    # layer2 + ReLU
    h2 = jnp.dot(h1.astype(jnp.bfloat16), w2_ref[...],
                 preferred_element_type=jnp.float32) + b2_ref[...]
    h2 = jnp.maximum(h2, 0.0)

    # layer3 (no activation); padded columns are irrelevant, we slice before storing.
    out = jnp.dot(h2.astype(jnp.bfloat16), w3_ref[...],
                  preferred_element_type=jnp.float32) + b3_ref[...]

    # Gate by data[:, 0:2] (kept in f32) and store only the real output lanes.
    gate = x[:, :n_out]
    o_ref[...] = (out[:, :n_out] * gate).astype(o_ref.dtype)


def _pad2(a, rows, cols):
    return jnp.pad(a, ((0, rows - a.shape[0]), (0, cols - a.shape[1])))


def controlnet_forward(data, params, *, tb=1024, single_block_rows=1024):
    """data: [B, n_input] f32; params: dict of w1,b1,w2,b2,w3,b3 ([in,out] / [1,out])."""
    B, n_input = data.shape
    n_output = params["w3"].shape[1]
    # Gate semantics of the original module require exactly 2 output features.
    assert n_output == 2 and n_input >= 2, "gate requires n_output == 2 and n_input >= 2"

    f32, bf16 = jnp.float32, jnp.bfloat16

    # Pad weights once to full MXU tiles (zeros contribute nothing). Weights -> bf16,
    # biases stay f32 (added after the f32-accumulated matmul).
    in_pad = _round_up(max(n_input, LANE), LANE)
    h_pad = _round_up(max(params["w1"].shape[1], LANE), LANE)
    out_pad = LANE
    w1 = _pad2(params["w1"].astype(f32), in_pad, h_pad).astype(bf16)
    b1 = _pad2(params["b1"].astype(f32), 1, h_pad)
    w2 = _pad2(params["w2"].astype(f32), h_pad, h_pad).astype(bf16)
    b2 = _pad2(params["b2"].astype(f32), 1, h_pad)
    w3 = _pad2(params["w3"].astype(f32), h_pad, out_pad).astype(bf16)
    b3 = _pad2(params["b3"].astype(f32), 1, out_pad)

    # Batch tiling.
    B8 = _round_up(B, SUB)
    if B8 <= single_block_rows:
        tb_eff = B8                                   # single-block fast path (grid of 1)
    else:
        # Big tiles for HBM-DMA efficiency, but keep >= 2 grid steps so the "parallel"
        # batch axis can shard across v7x's two TensorCores.
        tb_eff = max(SUB, min(_round_up(tb, SUB), _round_up(pl.cdiv(B, 2), SUB)))
    Bp = pl.cdiv(B, tb_eff) * tb_eff
    x = data.astype(f32)
    if Bp != B:
        x = jnp.pad(x, ((0, Bp - B), (0, 0)))         # a few rows at most
    grid = (Bp // tb_eff,)

    x_spec = pl.BlockSpec((tb_eff, n_input), lambda i: (i, 0))       # full last dim (no 128 pad)
    o_spec = pl.BlockSpec((tb_eff, n_output), lambda i: (i, 0))      # narrow output, full last dim
    w1_spec = pl.BlockSpec((in_pad, h_pad), lambda i: (0, 0))        # resident across grid steps
    w2_spec = pl.BlockSpec((h_pad, h_pad), lambda i: (0, 0))
    w3_spec = pl.BlockSpec((h_pad, out_pad), lambda i: (0, 0))
    bh_spec = pl.BlockSpec((1, h_pad), lambda i: (0, 0))
    bo_spec = pl.BlockSpec((1, out_pad), lambda i: (0, 0))

    # Advisory cost estimate: padded-tile flops, *real* activation bytes moved.
    flops = 2 * Bp * (in_pad * h_pad + h_pad * h_pad + h_pad * out_pad)
    bytes_accessed = (4 * Bp * n_input + 4 * Bp * n_output
                      + 2 * (in_pad * h_pad + h_pad * h_pad + h_pad * out_pad)
                      + 4 * (2 * h_pad + out_pad))

    out = pl.pallas_call(
        controlnet_kernel,
        out_shape=jax.ShapeDtypeStruct((Bp, n_output), f32),
        grid=grid,
        in_specs=[x_spec, w1_spec, bh_spec, w2_spec, bh_spec, w3_spec, bo_spec],
        out_specs=o_spec,
        compiler_params=pltpu.CompilerParams(
            dimension_semantics=("parallel",),   # megacore sharding on v7x; no-op on v5e/v6e
        ),
        cost_estimate=pl.CostEstimate(
            flops=flops, transcendentals=0, bytes_accessed=bytes_accessed
        ),
    )(x, w1, b1, w2, b2, w3, b3)

    return out[:B] if Bp != B else out


def init_params(key, n_input, n_hidden, n_output):
    """Deterministic init mimicking torch.nn.Linear (uniform(-1/sqrt(in), 1/sqrt(in)))."""
    ks = jax.random.split(key, 6)

    def linear(kw, kb, fan_in, fan_out):
        bound = 1.0 / jnp.sqrt(jnp.float32(fan_in))
        w = jax.random.uniform(kw, (fan_in, fan_out), jnp.float32, -bound, bound)
        b = jax.random.uniform(kb, (1, fan_out), jnp.float32, -bound, bound)
        return w, b

    w1, b1 = linear(ks[0], ks[1], n_input, n_hidden)
    w2, b2 = linear(ks[2], ks[3], n_hidden, n_hidden)
    w3, b3 = linear(ks[4], ks[5], n_hidden, n_output)
    return {"w1": w1, "b1": b1, "w2": w2, "b2": b2, "w3": w3, "b3": b3}


def reference_forward(data, p):
    h1 = jnp.maximum(data @ p["w1"] + p["b1"], 0.0)
    h2 = jnp.maximum(h1 @ p["w2"] + p["b2"], 0.0)
    out = h2 @ p["w3"] + p["b3"]
    return out * data[:, 0:2]


if __name__ == "__main__":
    B, n_input, n_hidden, n_output = 256, 4, 32, 2

    key = jax.random.PRNGKey(0)
    k_data, k_param = jax.random.split(key)

    data = jax.random.normal(k_data, (B, n_input), dtype=jnp.float32)
    params = init_params(k_param, n_input, n_hidden, n_output)
    ref = reference_forward(data, params)

    # Single-block fast path (grid of 1).
    out = jax.block_until_ready(controlnet_forward(data, params))
    assert out.shape == (B, n_output)
    # bf16 MXU inputs (f32 accumulate) -> loosened tolerance vs the f32 reference.
    assert jnp.allclose(out, ref, atol=3e-2, rtol=3e-2), "mismatch vs reference (single block)"

    # Also exercise the pipelined multi-step grid path (2 steps of 128 rows).
    out2 = jax.block_until_ready(
        controlnet_forward(data, params, tb=128, single_block_rows=0))
    assert jnp.allclose(out2, ref, atol=3e-2, rtol=3e-2), "mismatch vs reference (gridded)"

    print("KERNEL_OK")
</pallas_src>

<mosaic_0001>
module attributes {stable_mosaic.version = 11 : i64} {
  func.func @controlnet_kernel(%arg0: i32, %arg1: memref<256x4xf32, #tpu.memory_space<vmem>>, %arg2: memref<128x128xbf16, #tpu.memory_space<vmem>>, %arg3: memref<1x128xf32, #tpu.memory_space<vmem>>, %arg4: memref<128x128xbf16, #tpu.memory_space<vmem>>, %arg5: memref<1x128xf32, #tpu.memory_space<vmem>>, %arg6: memref<128x128xbf16, #tpu.memory_space<vmem>>, %arg7: memref<1x128xf32, #tpu.memory_space<vmem>>, %arg8: memref<256x2xf32, #tpu.memory_space<vmem>>) attributes {dimension_semantics = [#tpu.dimension_semantics<parallel>], iteration_bounds = array<i64: 1>, scalar_prefetch = 0 : i64, scratch_operands = 0 : i64, tpu.core_type = #tpu.core_type<tc>, window_params = [{transform_indices = @transform_0, window_bounds = array<i64: 256, 4>}, {pipeline_mode = #tpu.pipeline_mode<synchronous>, transform_indices = @transform_1, window_bounds = array<i64: 128, 128>}, {pipeline_mode = #tpu.pipeline_mode<synchronous>, transform_indices = @transform_2, window_bounds = array<i64: 1, 128>}, {pipeline_mode = #tpu.pipeline_mode<synchronous>, transform_indices = @transform_3, window_bounds = array<i64: 128, 128>}, {pipeline_mode = #tpu.pipeline_mode<synchronous>, transform_indices = @transform_4, window_bounds = array<i64: 1, 128>}, {pipeline_mode = #tpu.pipeline_mode<synchronous>, transform_indices = @transform_5, window_bounds = array<i64: 128, 128>}, {pipeline_mode = #tpu.pipeline_mode<synchronous>, transform_indices = @transform_6, window_bounds = array<i64: 1, 128>}, {transform_indices = @transform_7, window_bounds = array<i64: 256, 2>}]} {
    %c0 = arith.constant 0 : index
    %c0_0 = arith.constant 0 : index
    %0 = vector.load %arg1[%c0, %c0_0] : memref<256x4xf32, #tpu.memory_space<vmem>>, vector<256x4xf32>
    %1 = arith.truncf %0 : vector<256x4xf32> to vector<256x4xbf16>
    %cst = arith.constant 0.000000e+00 : bf16
    %2 = vector.broadcast %cst : bf16 to vector<256x124xbf16>
    %3 = tpu.concatenate %1, %2 in 1 : vector<256x4xbf16>, vector<256x124xbf16> -> vector<256x128xbf16>
    %c0_1 = arith.constant 0 : index
    %c0_2 = arith.constant 0 : index
    %4 = vector.load %arg2[%c0_1, %c0_2] : memref<128x128xbf16, #tpu.memory_space<vmem>>, vector<128x128xbf16>
    %cst_3 = arith.constant dense<0.000000e+00> : vector<256x128xf32>
    %5 = tpu.matmul %3, %4, %cst_3 {dimension_numbers = #tpu.dot_dimension_numbers<[1], [0], [0], [1], [0, 0, 1, 1], [], []>} : vector<256x128xbf16>, vector<128x128xbf16>, vector<256x128xf32> -> vector<256x128xf32>
    %c0_4 = arith.constant 0 : index
    %c0_5 = arith.constant 0 : index
    %6 = vector.load %arg3[%c0_4, %c0_5] : memref<1x128xf32, #tpu.memory_space<vmem>>, vector<1x128xf32>
    %7 = vector.broadcast %6 : vector<1x128xf32> to vector<256x128xf32>
    %8 = arith.addf %5, %7 : vector<256x128xf32>
    %cst_6 = arith.constant 0.000000e+00 : f32
    %9 = vector.broadcast %cst_6 : f32 to vector<256x128xf32>
    %10 = arith.maximumf %8, %9 : vector<256x128xf32>
    %11 = arith.truncf %10 : vector<256x128xf32> to vector<256x128xbf16>
    %c0_7 = arith.constant 0 : index
    %c0_8 = arith.constant 0 : index
    %12 = vector.load %arg4[%c0_7, %c0_8] : memref<128x128xbf16, #tpu.memory_space<vmem>>, vector<128x128xbf16>
    %cst_9 = arith.constant dense<0.000000e+00> : vector<256x128xf32>
    %13 = tpu.matmul %11, %12, %cst_9 {dimension_numbers = #tpu.dot_dimension_numbers<[1], [0], [0], [1], [0, 0, 1, 1], [], []>} : vector<256x128xbf16>, vector<128x128xbf16>, vector<256x128xf32> -> vector<256x128xf32>
    %c0_10 = arith.constant 0 : index
    %c0_11 = arith.constant 0 : index
    %14 = vector.load %arg5[%c0_10, %c0_11] : memref<1x128xf32, #tpu.memory_space<vmem>>, vector<1x128xf32>
    %15 = vector.broadcast %14 : vector<1x128xf32> to vector<256x128xf32>
    %16 = arith.addf %13, %15 : vector<256x128xf32>
    %cst_12 = arith.constant 0.000000e+00 : f32
    %17 = vector.broadcast %cst_12 : f32 to vector<256x128xf32>
    %18 = arith.maximumf %16, %17 : vector<256x128xf32>
    %19 = arith.truncf %18 : vector<256x128xf32> to vector<256x128xbf16>
    %c0_13 = arith.constant 0 : index
    %c0_14 = arith.constant 0 : index
    %20 = vector.load %arg6[%c0_13, %c0_14] : memref<128x128xbf16, #tpu.memory_space<vmem>>, vector<128x128xbf16>
    %cst_15 = arith.constant dense<0.000000e+00> : vector<256x128xf32>
    %21 = tpu.matmul %19, %20, %cst_15 {dimension_numbers = #tpu.dot_dimension_numbers<[1], [0], [0], [1], [0, 0, 1, 1], [], []>} : vector<256x128xbf16>, vector<128x128xbf16>, vector<256x128xf32> -> vector<256x128xf32>
    %c0_16 = arith.constant 0 : index
    %c0_17 = arith.constant 0 : index
    %22 = vector.load %arg7[%c0_16, %c0_17] : memref<1x128xf32, #tpu.memory_space<vmem>>, vector<1x128xf32>
    %23 = vector.broadcast %22 : vector<1x128xf32> to vector<256x128xf32>
    %24 = arith.addf %21, %23 : vector<256x128xf32>
    %25 = vector.extract_strided_slice %0 {offsets = [0, 0], sizes = [256, 2], strides = [1, 1]} : vector<256x4xf32> to vector<256x2xf32>
    %26 = vector.extract_strided_slice %24 {offsets = [0, 0], sizes = [256, 2], strides = [1, 1]} : vector<256x128xf32> to vector<256x2xf32>
    %27 = arith.mulf %26, %25 : vector<256x2xf32>
    %c0_18 = arith.constant 0 : index
    %c0_19 = arith.constant 0 : index
    %28 = vector.load %arg8[%c0_18, %c0_19] : memref<256x2xf32, #tpu.memory_space<vmem>>, vector<256x2xf32>
    tpu.vector_store %arg8[%c0_18, %c0_19], %27 {strides = array<i32>} : memref<256x2xf32, #tpu.memory_space<vmem>>, vector<256x2xf32>,
    return
  }
  func.func @transform_0(%arg0: i32) -> (i32, i32) {
    %c0_i32 = arith.constant 0 : i32
    %c0_i32_0 = arith.constant 0 : i32
    return %arg0, %c0_i32 : i32, i32
  }
  func.func @transform_1(%arg0: i32) -> (i32, i32) {
    %c0_i32 = arith.constant 0 : i32
    %c0_i32_0 = arith.constant 0 : i32
    %c0_i32_1 = arith.constant 0 : i32
    return %c0_i32, %c0_i32_0 : i32, i32
  }
  func.func @transform_2(%arg0: i32) -> (i32, i32) {
    %c0_i32 = arith.constant 0 : i32
    %c0_i32_0 = arith.constant 0 : i32
    %c0_i32_1 = arith.constant 0 : i32
    return %c0_i32, %c0_i32_0 : i32, i32
  }
  func.func @transform_3(%arg0: i32) -> (i32, i32) {
    %c0_i32 = arith.constant 0 : i32
    %c0_i32_0 = arith.constant 0 : i32
    %c0_i32_1 = arith.constant 0 : i32
    return %c0_i32, %c0_i32_0 : i32, i32
  }
  func.func @transform_4(%arg0: i32) -> (i32, i32) {
    %c0_i32 = arith.constant 0 : i32
    %c0_i32_0 = arith.constant 0 : i32
    %c0_i32_1 = arith.constant 0 : i32
    return %c0_i32, %c0_i32_0 : i32, i32
  }
  func.func @transform_5(%arg0: i32) -> (i32, i32) {
    %c0_i32 = arith.constant 0 : i32
    %c0_i32_0 = arith.constant 0 : i32
    %c0_i32_1 = arith.constant 0 : i32
    return %c0_i32, %c0_i32_0 : i32, i32
  }
  func.func @transform_6(%arg0: i32) -> (i32, i32) {
    %c0_i32 = arith.constant 0 : i32
    %c0_i32_0 = arith.constant 0 : i32
    %c0_i32_1 = arith.constant 0 : i32
    return %c0_i32, %c0_i32_0 : i32, i32
  }
  func.func @transform_7(%arg0: i32) -> (i32, i32) {
    %c0_i32 = arith.constant 0 : i32
    %c0_i32_0 = arith.constant 0 : i32
    return %arg0, %c0_i32 : i32, i32
  }
}

</mosaic_0001>

<bundles_post_ra>
// kernel: tpu_custom_call.1
= control target key start
LH: loop header
LB: loop body
LE: loop exit
PB: predicated region body
PF: predicated region fallthrough
CT: control target
= control target key end

     0   :  { %vm75_vm0 = vcmask 31744   ;;  %vm949_vm1 = vcmask 15360   ;;  %s1891_s1 = inlined_call_operand.vmem [shape: bf16[128,128], index: 1, kind: input, shape index: {}]   ;;  %s1892_s0 = inlined_call_operand.vmem [shape: f32[256,4], index: 0, kind: input, shape index: {}]   ;;  %s1893_s3 = inlined_call_operand.vmem [shape: bf16[128,128], index: 3, kind: input, shape index: {}]   ;;  %s1894_s5 = inlined_call_operand.vmem [shape: bf16[128,128], index: 5, kind: input, shape index: {}]   ;;  %s1895_s2 = inlined_call_operand.vmem [shape: f32[1,128], index: 2, kind: input, shape index: {}]   ;;  %s1896_s4 = inlined_call_operand.vmem [shape: f32[1,128], index: 4, kind: input, shape index: {}]   ;;  %s1897_s6 = inlined_call_operand.vmem [shape: f32[1,128], index: 6, kind: input, shape index: {}]   ;;  %s1898_s7 = inlined_call_operand.vmem [shape: f32[256,2], index: 7, kind: output, shape index: {}]  }
   0x1   :  { %v1261_v0 = vld [vmem:[%s1891_s1 + $0x38] sm:$0xff]   ;;  %v1262_v1 = vld [vmem:[%s1891_s1 + $0x30] sm:$0xff]   ;;  %v1263_v2 = vld [vmem:[%s1891_s1 + $0x28] sm:$0xff]  }
   0x2   :  { %1101 = vmatprep.subr.bf16.mxu0 %v1261_v0  ;;  %1245 = vmatprep.subr.bf16.mxu1 %v1261_v0  ;;  %v1264_v3 = vld [vmem:[%s1891_s1 + $0x20] sm:$0xff]   ;;  %v1345_v5 = vld [vmem:[%s1892_s0 + $0x8] sm:$0xff]  ;;  %v1265_v7 = vld [vmem:[%s1891_s1 + $0x18] sm:$0xff]  }
   0x3   :  { %1102 = vmatpush3.bf16.msra.mxu0 %v1261_v0  ;;  %1253 = vmatpush3.bf16.msra.mxu1 %v1261_v0  ;;  %v1340_v4 = vld [vmem:[%s1892_s0] sm:$0xff]  ;;  %v1361_v9 = vld [vmem:[%s1892_s0 + $0x88] sm:$0xff]  ;;  %v1266_v11 = vld [vmem:[%s1891_s1 + $0x10] sm:$0xff]  }
   0x4   :  { %1103 = vmatprep.subr.bf16.mxu0 %v1262_v1  ;;  %1246 = vmatprep.subr.bf16.mxu1 %v1262_v1  ;;  %v59_v6 = vpack.c.bf16 %v1345_v5, %v1340_v4  ;;  %v1356_v8 = vld [vmem:[%s1892_s0 + $0x80] sm:$0xff]  ;;  %v1267_v12 = vld [vmem:[%s1891_s1 + $0x8] sm:$0xff]   ;;  %v1378_v14 = vld [vmem:[%s1892_s0 + $0x10] sm:$0xff] }
   0x5   :  { %v67_v10 = vpack.c.bf16 %v1361_v9, %v1356_v8  ;;  %v1268_v13 = vld [vmem:[%s1891_s1] sm:$0xff]   ;;  %v1383_v15 = vld [vmem:[%s1892_s0 + $0x18] sm:$0xff]  ;;  %v1393_v17 = vld [vmem:[%s1892_s0 + $0x28] sm:$0xff] }
   0x6   :  { %1117 = vmatprep.mubr.msk.bf16.mxu0 %vm75_vm0, %v59_v6  ;;  %v1388_v16 = vld [vmem:[%s1892_s0 + $0x20] sm:$0xff]  ;;  %v1398_v18 = vld [vmem:[%s1892_s0 + $0x90] sm:$0xff]  ;;  %v1403_v19 = vld [vmem:[%s1892_s0 + $0x98] sm:$0xff]  ;;  %v60_v23 = vpack.c.bf16 %v1383_v15, %v1378_v14 }
   0x7   :  { %1104 = vmatpush3.bf16.msra.mxu0 %v1262_v1  ;;  %1254 = vmatpush3.bf16.msra.mxu1 %v1262_v1  ;;  %v1408_v20 = vld [vmem:[%s1892_s0 + $0xa0] sm:$0xff]  ;;  %v1413_v21 = vld [vmem:[%s1892_s0 + $0xa8] sm:$0xff]  ;;  %v1269_v22 = vld [vmem:[%s1893_s3 + $0x38] sm:$0xff]   ;;  %v61_v24 = vpack.c.bf16 %v1393_v17, %v1388_v16  ;;  %v68_v25 = vpack.c.bf16 %v1403_v19, %v1398_v18 }
   0x8   :  { %1105 = vmatprep.subr.bf16.mxu0 %v1263_v2  ;;  %1247 = vmatprep.subr.bf16.mxu1 %v1263_v2  ;;  %v69_v26 = vpack.c.bf16 %v1413_v21, %v1408_v20  ;;  %v1270_v27 = vld [vmem:[%s1893_s3 + $0x30] sm:$0xff]   ;;  %v1439_v29 = vld [vmem:[%s1892_s0 + $0x38] sm:$0xff]  ;;  %v1444_v30 = vld [vmem:[%s1892_s0 + $0x40] sm:$0xff] }
   0x9   :  { %1133 = vmatprep.mubr.msk.bf16.mxu1 %vm75_vm0, %v67_v10  ;;  %v1434_v28 = vld [vmem:[%s1892_s0 + $0x30] sm:$0xff]  ;;  %v1450_v31 = vld [vmem:[%s1892_s0 + $0x48] sm:$0xff]  ;;  %v1461_v33 = vld [vmem:[%s1892_s0 + $0xb8] sm:$0xff] }
   0xa   :  { %v1456_v32 = vld [vmem:[%s1892_s0 + $0xb0] sm:$0xff]  ;;  %v1466_v34 = vld [vmem:[%s1892_s0 + $0xc0] sm:$0xff]  ;;  %v1471_v35 = vld [vmem:[%s1892_s0 + $0xc8] sm:$0xff]  ;;  %v62_v37 = vpack.c.bf16 %v1439_v29, %v1434_v28  ;;  %v63_v38 = vpack.c.bf16 %v1450_v31, %v1444_v30 }
   0xb   :  { %1106 = vmatpush3.bf16.msra.mxu0 %v1263_v2  ;;  %1255 = vmatpush3.bf16.msra.mxu1 %v1263_v2  ;;  %v1271_v36 = vld [vmem:[%s1893_s3 + $0x28] sm:$0xff]   ;;  %v70_v39 = vpack.c.bf16 %v1461_v33, %v1456_v32  ;;  %v71_v40 = vpack.c.bf16 %v1471_v35, %v1466_v34  ;;  %v1272_v41 = vld [vmem:[%s1893_s3 + $0x20] sm:$0xff]   ;;  %v1492_v42 = vld [vmem:[%s1892_s0 + $0x50] sm:$0xff] }
   0xc   :  { %1107 = vmatprep.subr.bf16.mxu0 %v1264_v3  ;;  %1248 = vmatprep.subr.bf16.mxu1 %v1264_v3  ;;  %v1497_v43 = vld [vmem:[%s1892_s0 + $0x58] sm:$0xff]  ;;  %v1502_v44 = vld [vmem:[%s1892_s0 + $0x60] sm:$0xff]  ;;  %v1508_v45 = vld [vmem:[%s1892_s0 + $0x68] sm:$0xff] }
   0xd   :  { %v1514_v46 = vld [vmem:[%s1892_s0 + $0xd0] sm:$0xff]  ;;  %v1519_v47 = vld [vmem:[%s1892_s0 + $0xd8] sm:$0xff]  ;;  %v1524_v48 = vld [vmem:[%s1892_s0 + $0xe0] sm:$0xff]  ;;  %v64_v51 = vpack.c.bf16 %v1497_v43, %v1492_v42  ;;  %v65_v52 = vpack.c.bf16 %v1508_v45, %v1502_v44 }
   0xe   :  { %v1529_v49 = vld [vmem:[%s1892_s0 + $0xe8] sm:$0xff]  ;;  %v1273_v50 = vld [vmem:[%s1893_s3 + $0x18] sm:$0xff]   ;;  %v72_v53 = vpack.c.bf16 %v1519_v47, %v1514_v46  ;;  %v1547_v55 = vld [vmem:[%s1892_s0 + $0x70] sm:$0xff] }
   0xf   :  { %1108 = vmatpush3.bf16.msra.mxu0 %v1264_v3  ;;  %1256 = vmatpush3.bf16.msra.mxu1 %v1264_v3  ;;  %v73_v54 = vpack.c.bf16 %v1529_v49, %v1524_v48  ;;  %v1552_v56 = vld [vmem:[%s1892_s0 + $0x78] sm:$0xff]  ;;  %v1559_v57 = vld [vmem:[%s1892_s0 + $0xf0] sm:$0xff]  ;;  %v1275_v62 = vld [vmem:[%s1893_s3 + $0x8] sm:$0xff]  }
  0x10   :  { %1109 = vmatprep.subr.bf16.mxu0 %v1265_v7  ;;  %1249 = vmatprep.subr.bf16.mxu1 %v1265_v7  ;;  %v1564_v58 = vld [vmem:[%s1892_s0 + $0xf8] sm:$0xff]  ;;  %v66_v59 = vpack.c.bf16 %v1552_v56, %v1547_v55  ;;  %v1274_v61 = vld [vmem:[%s1893_s3 + $0x10] sm:$0xff]   ;;  %v1276_v63 = vld [vmem:[%s1893_s3] sm:$0xff]  }
  0x11   :  { %v74_v60 = vpack.c.bf16 %v1564_v58, %v1559_v57  ;;  %v1277_v0 = vld [vmem:[%s1894_s5 + $0x38] sm:$0xff]   ;;  %v1278_v1 = vld [vmem:[%s1894_s5 + $0x30] sm:$0xff]   ;;  %v1279_v2 = vld [vmem:[%s1894_s5 + $0x28] sm:$0xff]  }
  0x12   :  { %v1280_v3 = vld [vmem:[%s1894_s5 + $0x20] sm:$0xff]   ;;  %v1281_v6 = vld [vmem:[%s1894_s5 + $0x18] sm:$0xff]  }
  0x13   :  { %1110 = vmatpush3.bf16.msra.mxu0 %v1265_v7  ;;  %1257 = vmatpush3.bf16.msra.mxu1 %v1265_v7 }
  0x14   :  { %1111 = vmatprep.subr.bf16.mxu0 %v1266_v11  ;;  %1250 = vmatprep.subr.bf16.mxu1 %v1266_v11 }
  0x17   :  { %1112 = vmatpush3.bf16.msra.mxu0 %v1266_v11  ;;  %1258 = vmatpush3.bf16.msra.mxu1 %v1266_v11 }
  0x18   :  { %1113 = vmatprep.subr.bf16.mxu0 %v1267_v12  ;;  %1251 = vmatprep.subr.bf16.mxu1 %v1267_v12 }
  0x1b   :  { %1114 = vmatpush3.bf16.msra.mxu0 %v1267_v12  ;;  %1259 = vmatpush3.bf16.msra.mxu1 %v1267_v12  ;;  %v1601_v12 = vld [vmem:[%s1895_s2] ss:$0 sm:$0xff] }
  0x1c   :  { %1115 = vmatprep.subr.bf16.mxu0 %v1268_v13  ;;  %1252 = vmatprep.subr.bf16.mxu1 %v1268_v13 }
  0x1f   :  { %1116 = vmatpush3.bf16.msra.mxu0 %v1268_v13  ;;  %1260 = vmatpush3.bf16.msra.mxu1 %v1268_v13 }
  0x20   :  { %1149 = vmatprep.subr.bf16.mxu1 %v1269_v22  ;;  %1197 = vmatprep.subr.bf16.mxu0 %v1277_v0 }
  0x22   :  { %1118 = vmatmul.mubr.msk.bf16.vlgmr.msra.gmra.mxu0 %vm75_vm0, %v60_v23  ;;  %1134 = vmatmul.mubr.msk.bf16.vlgmr.msra.gmra.mxu1 %vm75_vm0, %v68_v25 }
  0x23   :  { %1121 = vmatprep.mubr.msk.bf16.mxu0 %vm75_vm0, %v61_v24  ;;  %1137 = vmatprep.mubr.msk.bf16.mxu1 %vm75_vm0, %v69_v26 }
  0x24   :  { %1150 = vmatpush3.bf16.msra.mxu1 %v1269_v22  ;;  %1198 = vmatpush3.bf16.msra.mxu0 %v1277_v0 }
  0x25   :  { %1151 = vmatprep.subr.bf16.mxu1 %v1270_v27  ;;  %1199 = vmatprep.subr.bf16.mxu0 %v1278_v1 }
  0x28   :  { %1152 = vmatpush3.bf16.msra.mxu1 %v1270_v27  ;;  %1200 = vmatpush3.bf16.msra.mxu0 %v1278_v1 }
  0x29   :  { %1153 = vmatprep.subr.bf16.mxu1 %v1271_v36  ;;  %1201 = vmatprep.subr.bf16.mxu0 %v1279_v2 }
  0x2a   :  { %1122 = vmatmul.mubr.msk.bf16.gmra.mxu0 %vm75_vm0, %v62_v37  ;;  %1138 = vmatmul.mubr.msk.bf16.gmra.mxu1 %vm75_vm0, %v70_v39 }
  0x2b   :  { %1125 = vmatprep.mubr.msk.bf16.mxu0 %vm75_vm0, %v63_v38  ;;  %1141 = vmatprep.mubr.msk.bf16.mxu1 %vm75_vm0, %v71_v40 }
  0x2c   :  { %1154 = vmatpush3.bf16.msra.mxu1 %v1271_v36  ;;  %1202 = vmatpush3.bf16.msra.mxu0 %v1279_v2 }
  0x2d   :  { %1155 = vmatprep.subr.bf16.mxu1 %v1272_v41  ;;  %1203 = vmatprep.subr.bf16.mxu0 %v1280_v3 }
  0x30   :  { %1156 = vmatpush3.bf16.msra.mxu1 %v1272_v41  ;;  %1204 = vmatpush3.bf16.msra.mxu0 %v1280_v3 }
  0x31   :  { %1157 = vmatprep.subr.bf16.mxu1 %v1273_v50  ;;  %1205 = vmatprep.subr.bf16.mxu0 %v1281_v6 }
  0x32   :  { %1126 = vmatmul.mubr.msk.bf16.gmra.mxu0 %vm75_vm0, %v64_v51  ;;  %1142 = vmatmul.mubr.msk.bf16.gmra.mxu1 %vm75_vm0, %v72_v53 }
  0x33   :  { %1129 = vmatprep.mubr.msk.bf16.mxu0 %vm75_vm0, %v65_v52  ;;  %1145 = vmatprep.mubr.msk.bf16.mxu1 %vm75_vm0, %v73_v54 }
  0x34   :  { %1158 = vmatpush3.bf16.msra.mxu1 %v1273_v50  ;;  %1206 = vmatpush3.bf16.msra.mxu0 %v1281_v6 }
  0x35   :  { %1159 = vmatprep.subr.bf16.mxu1 %v1274_v61 }
  0x38   :  { %1160 = vmatpush3.bf16.msra.mxu1 %v1274_v61 }
  0x39   :  { %1161 = vmatprep.subr.bf16.mxu1 %v1275_v62 }
  0x3a   :  { %1130 = vmatmul.mubr.msk.bf16.gmra.mxu0 %vm75_vm0, %v66_v59  ;;  %1146 = vmatmul.mubr.msk.bf16.gmra.mxu1 %vm75_vm0, %v74_v60 }
  0x3c   :  { %1162 = vmatpush3.bf16.msra.mxu1 %v1275_v62 }
  0x3d   :  { %1163 = vmatprep.subr.bf16.mxu1 %v1276_v63 }
  0x40   :  { %1164 = vmatpush3.bf16.msra.mxu1 %v1276_v63 }
  0xe2   :  { %v1119_v7 = vpop.f32.mrf.mxu0  ;;  %v1596_v10 = vpop.f32.mrf.mxu1 }
  0xe3   :  { %v239_v26 = vadd.f32 %v1119_v7, %v1601_v12 }
  0xe4   :  { %v230_v11 = vpop.f32.mrf.mxu0  ;;  %v294_v13 = vpop.f32.mrf.mxu1 }
  0xe5   :  { %v231_v23 = vadd.f32 %v1601_v12, %v230_v11  ;;  %v359_v51 = vmax.f32 %v239_v26, 0.0 }
  0xe6   :  { %v1120_v22 = vpop.f32.mrf.mxu0  ;;  %v1605_v25 = vpop.f32.mrf.mxu1 }
  0xe7   :  { %v242_v24 = vadd.f32 %v1120_v22, %v1601_v12  ;;  %v357_v40 = vmax.f32 %v231_v23, 0.0 }
  0xe8   :  { %v233_v27 = vpop.f32.mrf.mxu0  ;;  %v297_v37 = vpop.f32.mrf.mxu1 }
  0xe9   :  { %v234_v36 = vadd.f32 %v1601_v12, %v233_v27  ;;  %v360_v38 = vmax.f32 %v242_v24, 0.0 }
  0xea   :  { %v1123_v39 = vpop.f32.mrf.mxu0  ;;  %v1609_v50 = vpop.f32.mrf.mxu1 }
  0xeb   :  { %v358_v41 = vmax.f32 %v234_v36, 0.0  ;;  %v390_v59 = vpack.c.bf16 %v360_v38, %v359_v51  ;;  %v255_v0 = vadd.f32 %v1123_v39, %v1601_v12 }
  0xec   :  { %v246_v52 = vpop.f32.mrf.mxu0  ;;  %v310_v54 = vpop.f32.mrf.mxu1 }
  0xed   :  { %v389_v53 = vpack.c.bf16 %v358_v41, %v357_v40  ;;  %v247_v61 = vadd.f32 %v1601_v12, %v246_v52  ;;  %v363_v23 = vmax.f32 %v255_v0, 0.0 }
  0xee   :  { %v1124_v60 = vpop.f32.mrf.mxu0  ;;  %v1613_v63 = vpop.f32.mrf.mxu1 }
  0xef   :  { %v258_v62 = vadd.f32 %v1124_v60, %v1601_v12  ;;  %1165 = vmatprep.mubr.bf16.mxu1 %v389_v53  ;;  %v361_v11 = vmax.f32 %v247_v61, 0.0 }
  0xf0   :  { %v249_v1 = vpop.f32.mrf.mxu0  ;;  %1166 = vmatmul.mubr.bf16.vlgmr.msra.gmra.mxu1 %v390_v59  ;;  %v313_v7 = vpop.f32.mrf.mxu1 }
  0xf1   :  { %v250_v2 = vadd.f32 %v1601_v12, %v249_v1  ;;  %v364_v3 = vmax.f32 %v258_v62, 0.0 }
  0xf2   :  { %v1127_v6 = vpop.f32.mrf.mxu0  ;;  %v1617_v38 = vpop.f32.mrf.mxu1 }
  0xf3   :  { %v362_v22 = vmax.f32 %v250_v2, 0.0  ;;  %v392_v27 = vpack.c.bf16 %v364_v3, %v363_v23  ;;  %v271_v41 = vadd.f32 %v1127_v6, %v1601_v12  ;;  %v295_v3 = vadd.f32 %v1601_v12, %v294_v13 }
  0xf4   :  { %v262_v24 = vpop.f32.mrf.mxu0  ;;  %v326_v60 = vpop.f32.mrf.mxu1 }
  0xf5   :  { %v391_v26 = vpack.c.bf16 %v362_v22, %v361_v11  ;;  %v263_v40 = vadd.f32 %v1601_v12, %v262_v24  ;;  %v367_v0 = vmax.f32 %v271_v41, 0.0  ;;  %v298_v11 = vadd.f32 %v1601_v12, %v297_v37 }
  0xf6   :  { %v1128_v36 = vpop.f32.mrf.mxu0  ;;  %v1144_v24 = vpop.f32.mrf.mxu1 }
  0xf7   :  { %v274_v39 = vadd.f32 %v1128_v36, %v1601_v12  ;;  %1169 = vmatprep.mubr.bf16.mxu1 %v391_v26  ;;  %v365_v61 = vmax.f32 %v263_v40, 0.0  ;;  %v373_v40 = vmax.f32 %v295_v3, 0.0  ;;  %v374_v41 = vmax.f32 %v298_v11, 0.0 }
  0xf8   :  { %v265_v51 = vpop.f32.mrf.mxu0  ;;  %1170 = vmatmul.mubr.bf16.gmra.mxu1 %v392_v27  ;;  %v329_v13 = vpop.f32.mrf.mxu1  ;;  %v306_v3 = vadd.f32 %v1605_v25, %v1601_v12  ;;  %v322_v25 = vadd.f32 %v1613_v63, %v1601_v12 }
  0xf9   :  { %v266_v52 = vadd.f32 %v1601_v12, %v265_v51  ;;  %v368_v53 = vmax.f32 %v274_v39, 0.0 }
  0xfa   :  { %v1131_v59 = vpop.f32.mrf.mxu0 }
  0xfb   :  { %v366_v62 = vmax.f32 %v266_v52, 0.0  ;;  %v394_v22 = vpack.c.bf16 %v368_v53, %v367_v0  ;;  %v287_v27 = vadd.f32 %v1131_v59, %v1601_v12  ;;  %v311_v0 = vadd.f32 %v1601_v12, %v310_v54 }
  0xfc   :  { %v278_v1 = vpop.f32.mrf.mxu0  ;;  %v303_v59 = vadd.f32 %v1596_v10, %v1601_v12  ;;  %v327_v54 = vadd.f32 %v1601_v12, %v326_v60  ;;  %v319_v10 = vadd.f32 %v1609_v50, %v1601_v12  ;;  %v335_v50 = vadd.f32 %v1617_v38, %v1601_v12  ;;  %v1282_v38 = vld [vmem:[%s1894_s5 + $0x10] sm:$0xff]  }
  0xfd   :  { %v393_v2 = vpack.c.bf16 %v366_v62, %v365_v61  ;;  %v279_v6 = vadd.f32 %v1601_v12, %v278_v1  ;;  %v371_v53 = vmax.f32 %v287_v27, 0.0  ;;  %v397_v62 = vpack.c.bf16 %v374_v41, %v373_v40  ;;  %1207 = vmatprep.subr.bf16.mxu0 %v1282_v38 }
  0xfe   :  { %v1132_v23 = vpop.f32.mrf.mxu0  ;;  %v314_v1 = vadd.f32 %v1601_v12, %v313_v7  ;;  %v377_v11 = vmax.f32 %v311_v0, 0.0  ;;  %v330_v7 = vadd.f32 %v1601_v12, %v329_v13  ;;  %v381_v41 = vmax.f32 %v327_v54, 0.0  ;;  %1208 = vmatpush3.bf16.msra.mxu0 %v1282_v38 }
  0xff   :  { %v290_v26 = vadd.f32 %v1132_v23, %v1601_v12  ;;  %1173 = vmatprep.mubr.bf16.mxu1 %v393_v2  ;;  %v369_v52 = vmax.f32 %v279_v6, 0.0  ;;  %v375_v6 = vmax.f32 %v303_v59, 0.0  ;;  %v338_v0 = vadd.f32 %v1144_v24, %v1601_v12  ;;  %v1283_v24 = vld [vmem:[%s1894_s5 + $0x8] sm:$0xff]  }
 0x100   :  { %v281_v36 = vpop.f32.mrf.mxu0  ;;  %1174 = vmatmul.mubr.bf16.gmra.mxu1 %v394_v22  ;;  %v1147_v22 = vpop.f32.mrf.mxu1  ;;  %v378_v23 = vmax.f32 %v314_v1, 0.0  ;;  %v383_v59 = vmax.f32 %v335_v50, 0.0  ;;  %1209 = vmatprep.subr.bf16.mxu0 %v1283_v24 }
 0x101   :  { %v282_v39 = vadd.f32 %v1601_v12, %v281_v36  ;;  %v372_v51 = vmax.f32 %v290_v26, 0.0  ;;  %v376_v26 = vmax.f32 %v306_v3, 0.0 }
 0x102   :  { %v342_v27 = vpop.f32.mrf.mxu1  ;;  %v399_v36 = vpack.c.bf16 %v378_v23, %v377_v11  ;;  %v351_v23 = vadd.f32 %v1147_v22, %v1601_v12  ;;  %1210 = vmatpush3.bf16.msra.mxu0 %v1283_v24 }
 0x103   :  { %v370_v37 = vmax.f32 %v282_v39, 0.0  ;;  %v396_v2 = vpack.c.bf16 %v372_v51, %v371_v53  ;;  %v398_v40 = vpack.c.bf16 %v376_v26, %v375_v6  ;;  %v382_v51 = vmax.f32 %v330_v7, 0.0  ;;  %v1660_v7 = vld [vmem:[%s1896_s4] ss:$0 sm:$0xff] }
 0x104   :  { %v1148_v39 = vpop.f32.mrf.mxu1  ;;  %v343_v60 = vadd.f32 %v1601_v12, %v342_v27  ;;  %v387_v26 = vmax.f32 %v351_v23, 0.0 }
 0x105   :  { %v395_v61 = vpack.c.bf16 %v370_v37, %v369_v52  ;;  %v379_v52 = vmax.f32 %v319_v10, 0.0  ;;  %v380_v37 = vmax.f32 %v322_v25, 0.0  ;;  %v354_v6 = vadd.f32 %v1148_v39, %v1601_v12 }
 0x106   :  { %v345_v53 = vpop.f32.mrf.mxu1  ;;  %v385_v63 = vmax.f32 %v343_v60, 0.0 }
 0x107   :  { %1177 = vmatprep.mubr.bf16.mxu1 %v395_v61  ;;  %v401_v61 = vpack.c.bf16 %v382_v51, %v381_v41  ;;  %v346_v13 = vadd.f32 %v1601_v12, %v345_v53  ;;  %v388_v27 = vmax.f32 %v354_v6, 0.0  ;;  %v1284_v12 = vld [vmem:[%s1894_s5] sm:$0xff]  }
 0x108   :  { %1178 = vmatmul.mubr.bf16.gmra.mxu1 %v396_v2  ;;  %v384_v2 = vmax.f32 %v338_v0, 0.0  ;;  %1211 = vmatprep.subr.bf16.mxu0 %v1284_v12 }
 0x109   :  { %1181 = vmatprep.mubr.bf16.mxu1 %v397_v62  ;;  %v400_v62 = vpack.c.bf16 %v380_v37, %v379_v52  ;;  %v386_v1 = vmax.f32 %v346_v13, 0.0  ;;  %1212 = vmatpush3.bf16.msra.mxu0 %v1284_v12 }
 0x10a   :  { %v402_v11 = vpack.c.bf16 %v384_v2, %v383_v59 }
 0x10b   :  { %v403_v3 = vpack.c.bf16 %v386_v1, %v385_v63 }
 0x110   :  { %1182 = vmatmul.mubr.bf16.gmra.mxu1 %v398_v40 }
 0x111   :  { %1185 = vmatprep.mubr.bf16.mxu1 %v399_v36  ;;  %v404_v36 = vpack.c.bf16 %v388_v27, %v387_v26 }
 0x118   :  { %1186 = vmatmul.mubr.bf16.gmra.mxu1 %v400_v62 }
 0x119   :  { %1189 = vmatprep.mubr.bf16.mxu1 %v401_v61 }
 0x120   :  { %1190 = vmatmul.mubr.bf16.gmra.mxu1 %v402_v11 }
 0x121   :  { %1193 = vmatprep.mubr.bf16.mxu1 %v403_v3 }
 0x128   :  { %1194 = vmatmul.mubr.bf16.gmra.mxu1 %v404_v36 }
 0x1b0   :  { %v1167_v22 = vpop.f32.mrf.mxu1 }
 0x1b1   :  { %v519_v39 = vadd.f32 %v1167_v22, %v1660_v7 }
 0x1b2   :  { %v510_v54 = vpop.f32.mrf.mxu1 }
 0x1b3   :  { %v511_v10 = vadd.f32 %v1660_v7, %v510_v54  ;;  %v639_v60 = vmax.f32 %v519_v39, 0.0 }
 0x1b4   :  { %v1168_v40 = vpop.f32.mrf.mxu1 }
 0x1b5   :  { %v522_v25 = vadd.f32 %v1168_v40, %v1660_v7  ;;  %v637_v53 = vmax.f32 %v511_v10, 0.0 }
 0x1b6   :  { %v513_v41 = vpop.f32.mrf.mxu1 }
 0x1b7   :  { %v514_v51 = vadd.f32 %v1660_v7, %v513_v41  ;;  %v640_v52 = vmax.f32 %v522_v25, 0.0 }
 0x1b8   :  { %v1171_v37 = vpop.f32.mrf.mxu1 }
 0x1b9   :  { %v638_v61 = vmax.f32 %v514_v51, 0.0  ;;  %v670_v50 = vpack.c.bf16 %v640_v52, %v639_v60  ;;  %v535_v59 = vadd.f32 %v1171_v37, %v1660_v7 }
 0x1ba   :  { %v526_v13 = vpop.f32.mrf.mxu1 }
 0x1bb   :  { %v669_v62 = vpack.c.bf16 %v638_v61, %v637_v53  ;;  %v527_v63 = vadd.f32 %v1660_v7, %v526_v13  ;;  %v643_v27 = vmax.f32 %v535_v59, 0.0 }
 0x1bc   :  { %v1172_v0 = vpop.f32.mrf.mxu1 }
 0x1bd   :  { %v538_v1 = vadd.f32 %v1172_v0, %v1660_v7  ;;  %1213 = vmatprep.mubr.bf16.mxu0 %v669_v62  ;;  %v641_v6 = vmax.f32 %v527_v63, 0.0 }
 0x1be   :  { %v529_v2 = vpop.f32.mrf.mxu1  ;;  %1214 = vmatmul.mubr.bf16.vlgmr.msra.gmra.mxu0 %v670_v50 }
 0x1bf   :  { %v530_v3 = vadd.f32 %v1660_v7, %v529_v2  ;;  %v644_v11 = vmax.f32 %v538_v1, 0.0 }
 0x1c0   :  { %v1175_v23 = vpop.f32.mrf.mxu1 }
 0x1c1   :  { %v642_v26 = vmax.f32 %v530_v3, 0.0  ;;  %v672_v24 = vpack.c.bf16 %v644_v11, %v643_v27  ;;  %v551_v40 = vadd.f32 %v1175_v23, %v1660_v7 }
 0x1c2   :  { %v542_v36 = vpop.f32.mrf.mxu1 }
 0x1c3   :  { %v671_v38 = vpack.c.bf16 %v642_v26, %v641_v6  ;;  %v543_v22 = vadd.f32 %v1660_v7, %v542_v36  ;;  %v647_v37 = vmax.f32 %v551_v40, 0.0 }
 0x1c4   :  { %v1176_v12 = vpop.f32.mrf.mxu1 }
 0x1c5   :  { %v554_v54 = vadd.f32 %v1176_v12, %v1660_v7  ;;  %1217 = vmatprep.mubr.bf16.mxu0 %v671_v38  ;;  %v645_v51 = vmax.f32 %v543_v22, 0.0 }
 0x1c6   :  { %v545_v10 = vpop.f32.mrf.mxu1  ;;  %1218 = vmatmul.mubr.bf16.gmra.mxu0 %v672_v24 }
 0x1c7   :  { %v546_v25 = vadd.f32 %v1660_v7, %v545_v10  ;;  %v648_v39 = vmax.f32 %v554_v54, 0.0 }
 0x1c8   :  { %v1179_v41 = vpop.f32.mrf.mxu1 }
 0x1c9   :  { %v646_v52 = vmax.f32 %v546_v25, 0.0  ;;  %v674_v60 = vpack.c.bf16 %v648_v39, %v647_v37  ;;  %v567_v0 = vadd.f32 %v1179_v41, %v1660_v7 }
 0x1ca   :  { %v558_v53 = vpop.f32.mrf.mxu1 }
 0x1cb   :  { %v673_v61 = vpack.c.bf16 %v646_v52, %v645_v51  ;;  %v559_v62 = vadd.f32 %v1660_v7, %v558_v53  ;;  %v651_v23 = vmax.f32 %v567_v0, 0.0 }
 0x1cc   :  { %v1180_v13 = vpop.f32.mrf.mxu1 }
 0x1cd   :  { %v570_v50 = vadd.f32 %v1180_v13, %v1660_v7  ;;  %1221 = vmatprep.mubr.bf16.mxu0 %v673_v61  ;;  %v649_v3 = vmax.f32 %v559_v62, 0.0 }
 0x1ce   :  { %v561_v63 = vpop.f32.mrf.mxu1  ;;  %1222 = vmatmul.mubr.bf16.gmra.mxu0 %v674_v60 }
 0x1cf   :  { %v562_v1 = vadd.f32 %v1660_v7, %v561_v63  ;;  %v652_v59 = vmax.f32 %v570_v50, 0.0 }
 0x1d0   :  { %v1183_v2 = vpop.f32.mrf.mxu1 }
 0x1d1   :  { %v650_v11 = vmax.f32 %v562_v1, 0.0  ;;  %v676_v27 = vpack.c.bf16 %v652_v59, %v651_v23  ;;  %v583_v12 = vadd.f32 %v1183_v2, %v1660_v7 }
 0x1d2   :  { %v574_v6 = vpop.f32.mrf.mxu1 }
 0x1d3   :  { %v675_v26 = vpack.c.bf16 %v650_v11, %v649_v3  ;;  %v575_v38 = vadd.f32 %v1660_v7, %v574_v6  ;;  %v655_v41 = vmax.f32 %v583_v12, 0.0 }
 0x1d4   :  { %v1184_v36 = vpop.f32.mrf.mxu1 }
 0x1d5   :  { %v586_v24 = vadd.f32 %v1184_v36, %v1660_v7  ;;  %1225 = vmatprep.mubr.bf16.mxu0 %v675_v26  ;;  %v653_v25 = vmax.f32 %v575_v38, 0.0 }
 0x1d6   :  { %v577_v22 = vpop.f32.mrf.mxu1  ;;  %1226 = vmatmul.mubr.bf16.gmra.mxu0 %v676_v27 }
 0x1d7   :  { %v578_v54 = vadd.f32 %v1660_v7, %v577_v22  ;;  %v656_v40 = vmax.f32 %v586_v24, 0.0 }
 0x1d8   :  { %v1187_v10 = vpop.f32.mrf.mxu1 }
 0x1d9   :  { %v654_v39 = vmax.f32 %v578_v54, 0.0  ;;  %v678_v37 = vpack.c.bf16 %v656_v40, %v655_v41  ;;  %v599_v13 = vadd.f32 %v1187_v10, %v1660_v7 }
 0x1da   :  { %v590_v51 = vpop.f32.mrf.mxu1 }
 0x1db   :  { %v677_v52 = vpack.c.bf16 %v654_v39, %v653_v25  ;;  %v591_v61 = vadd.f32 %v1660_v7, %v590_v51  ;;  %v659_v2 = vmax.f32 %v599_v13, 0.0 }
 0x1dc   :  { %v1188_v53 = vpop.f32.mrf.mxu1 }
 0x1dd   :  { %v602_v60 = vadd.f32 %v1188_v53, %v1660_v7  ;;  %1229 = vmatprep.mubr.bf16.mxu0 %v677_v52  ;;  %v657_v1 = vmax.f32 %v591_v61, 0.0 }
 0x1de   :  { %v593_v62 = vpop.f32.mrf.mxu1  ;;  %1230 = vmatmul.mubr.bf16.gmra.mxu0 %v678_v37 }
 0x1df   :  { %v594_v50 = vadd.f32 %v1660_v7, %v593_v62  ;;  %v660_v0 = vmax.f32 %v602_v60, 0.0 }
 0x1e0   :  { %v1191_v63 = vpop.f32.mrf.mxu1 }
 0x1e1   :  { %v658_v59 = vmax.f32 %v594_v50, 0.0  ;;  %v680_v23 = vpack.c.bf16 %v660_v0, %v659_v2  ;;  %v615_v36 = vadd.f32 %v1191_v63, %v1660_v7 }
 0x1e2   :  { %v606_v3 = vpop.f32.mrf.mxu1 }
 0x1e3   :  { %v679_v11 = vpack.c.bf16 %v658_v59, %v657_v1  ;;  %v607_v26 = vadd.f32 %v1660_v7, %v606_v3  ;;  %v663_v10 = vmax.f32 %v615_v36, 0.0  ;;  %v1697_v59 = vld [vmem:[%s1897_s6] ss:$0 sm:$0xff] }
 0x1e4   :  { %v1192_v6 = vpop.f32.mrf.mxu1 }
 0x1e5   :  { %v618_v27 = vadd.f32 %v1192_v6, %v1660_v7  ;;  %1233 = vmatprep.mubr.bf16.mxu0 %v679_v11  ;;  %v661_v54 = vmax.f32 %v607_v26, 0.0 }
 0x1e6   :  { %v609_v38 = vpop.f32.mrf.mxu1  ;;  %1234 = vmatmul.mubr.bf16.gmra.mxu0 %v680_v23 }
 0x1e7   :  { %v610_v24 = vadd.f32 %v1660_v7, %v609_v38  ;;  %v664_v12 = vmax.f32 %v618_v27, 0.0 }
 0x1e8   :  { %v1195_v22 = vpop.f32.mrf.mxu1 }
 0x1e9   :  { %v662_v40 = vmax.f32 %v610_v24, 0.0  ;;  %v682_v41 = vpack.c.bf16 %v664_v12, %v663_v10  ;;  %v631_v53 = vadd.f32 %v1195_v22, %v1660_v7 }
 0x1ea   :  { %v622_v25 = vpop.f32.mrf.mxu1 }
 0x1eb   :  { %v681_v39 = vpack.c.bf16 %v662_v40, %v661_v54  ;;  %v623_v52 = vadd.f32 %v1660_v7, %v622_v25  ;;  %v667_v0 = vmax.f32 %v631_v53, 0.0 }
 0x1ec   :  { %v1196_v51 = vpop.f32.mrf.mxu1 }
 0x1ed   :  { %v634_v37 = vadd.f32 %v1196_v51, %v1660_v7  ;;  %1237 = vmatprep.mubr.bf16.mxu0 %v681_v39  ;;  %v665_v62 = vmax.f32 %v623_v52, 0.0 }
 0x1ee   :  { %v625_v61 = vpop.f32.mrf.mxu1  ;;  %1238 = vmatmul.mubr.bf16.gmra.mxu0 %v682_v41 }
 0x1ef   :  { %v626_v60 = vadd.f32 %v1660_v7, %v625_v61  ;;  %v668_v13 = vmax.f32 %v634_v37, 0.0 }
 0x1f1   :  { %v666_v50 = vmax.f32 %v626_v60, 0.0  ;;  %v684_v1 = vpack.c.bf16 %v668_v13, %v667_v0 }
 0x1f3   :  { %v683_v63 = vpack.c.bf16 %v666_v50, %v665_v62 }
 0x1f5   :  { %1241 = vmatprep.mubr.bf16.mxu0 %v683_v63 }
 0x1f6   :  { %1242 = vmatmul.mubr.bf16.gmra.mxu0 %v684_v1 }
 0x27e   :  { %v1215_v2 = vpop.f32.mrf.mxu0 }
 0x27f   :  { %v799_v3 = vadd.f32 %v1215_v2, %v1697_v59 }
 0x280   :  { %v790_v11 = vpop.f32.mrf.mxu0 }
 0x281   :  { %v919_v7 = vmul.f32 %v799_v3, %v1378_v14  ;;  %v791_v23 = vadd.f32 %v1697_v59, %v790_v11 }
 0x282   :  { %v1216_v6 = vpop.f32.mrf.mxu0 }
 0x283   :  { %952 = vst.msk [vmem:[%s1898_s7 + $0x10] sm:$0xff] %vm949_vm1, %v919_v7  ;;  %v917_v26 = vmul.f32 %v791_v23, %v1340_v4  ;;  %v802_v27 = vadd.f32 %v1216_v6, %v1697_v59 }
 0x284   :  { %v793_v36 = vpop.f32.mrf.mxu0 }
 0x285   :  { %950 = vst.msk [vmem:[%s1898_s7] sm:$0xff] %vm949_vm1, %v917_v26  ;;  %v920_v14 = vmul.f32 %v802_v27, %v1383_v15  ;;  %v794_v38 = vadd.f32 %v1697_v59, %v793_v36 }
 0x286   :  { %v1219_v24 = vpop.f32.mrf.mxu0 }
 0x287   :  { %953 = vst.msk [vmem:[%s1898_s7 + $0x18] sm:$0xff] %vm949_vm1, %v920_v14  ;;  %v918_v4 = vmul.f32 %v794_v38, %v1345_v5  ;;  %v815_v12 = vadd.f32 %v1219_v24, %v1697_v59 }
 0x288   :  { %v806_v22 = vpop.f32.mrf.mxu0 }
 0x289   :  { %951 = vst.msk [vmem:[%s1898_s7 + $0x8] sm:$0xff] %vm949_vm1, %v918_v4  ;;  %v923_v15 = vmul.f32 %v815_v12, %v1434_v28  ;;  %v807_v54 = vadd.f32 %v1697_v59, %v806_v22 }
 0x28a   :  { %v1220_v40 = vpop.f32.mrf.mxu0 }
 0x28b   :  { %956 = vst.msk [vmem:[%s1898_s7 + $0x30] sm:$0xff] %vm949_vm1, %v923_v15  ;;  %v921_v5 = vmul.f32 %v807_v54, %v1388_v16  ;;  %v818_v10 = vadd.f32 %v1220_v40, %v1697_v59 }
 0x28c   :  { %v809_v25 = vpop.f32.mrf.mxu0 }
 0x28d   :  { %954 = vst.msk [vmem:[%s1898_s7 + $0x20] sm:$0xff] %vm949_vm1, %v921_v5  ;;  %v924_v28 = vmul.f32 %v818_v10, %v1439_v29  ;;  %v810_v39 = vadd.f32 %v1697_v59, %v809_v25 }
 0x28e   :  { %v1223_v41 = vpop.f32.mrf.mxu0 }
 0x28f   :  { %957 = vst.msk [vmem:[%s1898_s7 + $0x38] sm:$0xff] %vm949_vm1, %v924_v28  ;;  %v922_v16 = vmul.f32 %v810_v39, %v1393_v17  ;;  %v831_v51 = vadd.f32 %v1223_v41, %v1697_v59 }
 0x290   :  { %v822_v52 = vpop.f32.mrf.mxu0 }
 0x291   :  { %955 = vst.msk [vmem:[%s1898_s7 + $0x28] sm:$0xff] %vm949_vm1, %v922_v16  ;;  %v927_v29 = vmul.f32 %v831_v51, %v1492_v42  ;;  %v823_v37 = vadd.f32 %v1697_v59, %v822_v52 }
 0x292   :  { %v1224_v53 = vpop.f32.mrf.mxu0 }
 0x293   :  { %960 = vst.msk [vmem:[%s1898_s7 + $0x50] sm:$0xff] %vm949_vm1, %v927_v29  ;;  %v925_v17 = vmul.f32 %v823_v37, %v1444_v30  ;;  %v834_v61 = vadd.f32 %v1224_v53, %v1697_v59 }
 0x294   :  { %v825_v60 = vpop.f32.mrf.mxu0 }
 0x295   :  { %958 = vst.msk [vmem:[%s1898_s7 + $0x40] sm:$0xff] %vm949_vm1, %v925_v17  ;;  %v928_v42 = vmul.f32 %v834_v61, %v1497_v43  ;;  %v826_v13 = vadd.f32 %v1697_v59, %v825_v60 }
 0x296   :  { %v1227_v62 = vpop.f32.mrf.mxu0 }
 0x297   :  { %961 = vst.msk [vmem:[%s1898_s7 + $0x58] sm:$0xff] %vm949_vm1, %v928_v42  ;;  %v926_v30 = vmul.f32 %v826_v13, %v1450_v31  ;;  %v847_v50 = vadd.f32 %v1227_v62, %v1697_v59 }
 0x298   :  { %v838_v0 = vpop.f32.mrf.mxu0 }
 0x299   :  { %959 = vst.msk [vmem:[%s1898_s7 + $0x48] sm:$0xff] %vm949_vm1, %v926_v30  ;;  %v931_v43 = vmul.f32 %v847_v50, %v1547_v55  ;;  %v839_v63 = vadd.f32 %v1697_v59, %v838_v0 }
 0x29a   :  { %v1228_v1 = vpop.f32.mrf.mxu0 }
 0x29b   :  { %964 = vst.msk [vmem:[%s1898_s7 + $0x70] sm:$0xff] %vm949_vm1, %v931_v43  ;;  %v929_v31 = vmul.f32 %v839_v63, %v1502_v44  ;;  %v850_v2 = vadd.f32 %v1228_v1, %v1697_v59 }
 0x29c   :  { %v841_v3 = vpop.f32.mrf.mxu0 }
 0x29d   :  { %962 = vst.msk [vmem:[%s1898_s7 + $0x60] sm:$0xff] %vm949_vm1, %v929_v31  ;;  %v932_v55 = vmul.f32 %v850_v2, %v1552_v56  ;;  %v842_v11 = vadd.f32 %v1697_v59, %v841_v3 }
 0x29e   :  { %v1231_v7 = vpop.f32.mrf.mxu0 }
 0x29f   :  { %965 = vst.msk [vmem:[%s1898_s7 + $0x78] sm:$0xff] %vm949_vm1, %v932_v55  ;;  %v930_v44 = vmul.f32 %v842_v11, %v1508_v45  ;;  %v863_v23 = vadd.f32 %v1231_v7, %v1697_v59 }
 0x2a0   :  { %v854_v6 = vpop.f32.mrf.mxu0 }
 0x2a1   :  { %963 = vst.msk [vmem:[%s1898_s7 + $0x68] sm:$0xff] %vm949_vm1, %v930_v44  ;;  %v935_v56 = vmul.f32 %v863_v23, %v1398_v18  ;;  %v855_v26 = vadd.f32 %v1697_v59, %v854_v6 }
 0x2a2   :  { %v1232_v27 = vpop.f32.mrf.mxu0 }
 0x2a3   :  { %968 = vst.msk [vmem:[%s1898_s7 + $0x90] sm:$0xff] %vm949_vm1, %v935_v56  ;;  %v933_v45 = vmul.f32 %v855_v26, %v1356_v8  ;;  %v866_v36 = vadd.f32 %v1232_v27, %v1697_v59 }
 0x2a4   :  { %v857_v14 = vpop.f32.mrf.mxu0 }
 0x2a5   :  { %966 = vst.msk [vmem:[%s1898_s7 + $0x80] sm:$0xff] %vm949_vm1, %v933_v45  ;;  %v936_v18 = vmul.f32 %v866_v36, %v1403_v19  ;;  %v858_v38 = vadd.f32 %v1697_v59, %v857_v14 }
 0x2a6   :  { %v1235_v24 = vpop.f32.mrf.mxu0 }
 0x2a7   :  { %969 = vst.msk [vmem:[%s1898_s7 + $0x98] sm:$0xff] %vm949_vm1, %v936_v18  ;;  %v934_v8 = vmul.f32 %v858_v38, %v1361_v9  ;;  %v879_v4 = vadd.f32 %v1235_v24, %v1697_v59 }
 0x2a8   :  { %v870_v12 = vpop.f32.mrf.mxu0 }
 0x2a9   :  { %967 = vst.msk [vmem:[%s1898_s7 + $0x88] sm:$0xff] %vm949_vm1, %v934_v8  ;;  %v939_v19 = vmul.f32 %v879_v4, %v1456_v32  ;;  %v871_v22 = vadd.f32 %v1697_v59, %v870_v12 }
 0x2aa   :  { %v1236_v15 = vpop.f32.mrf.mxu0 }
 0x2ab   :  { %972 = vst.msk [vmem:[%s1898_s7 + $0xb0] sm:$0xff] %vm949_vm1, %v939_v19  ;;  %v937_v9 = vmul.f32 %v871_v22, %v1408_v20  ;;  %v882_v54 = vadd.f32 %v1236_v15, %v1697_v59 }
 0x2ac   :  { %v873_v40 = vpop.f32.mrf.mxu0 }
 0x2ad   :  { %970 = vst.msk [vmem:[%s1898_s7 + $0xa0] sm:$0xff] %vm949_vm1, %v937_v9  ;;  %v940_v32 = vmul.f32 %v882_v54, %v1461_v33  ;;  %v874_v5 = vadd.f32 %v1697_v59, %v873_v40 }
 0x2ae   :  { %v1239_v10 = vpop.f32.mrf.mxu0 }
 0x2af   :  { %973 = vst.msk [vmem:[%s1898_s7 + $0xb8] sm:$0xff] %vm949_vm1, %v940_v32  ;;  %v938_v20 = vmul.f32 %v874_v5, %v1413_v21  ;;  %v895_v25 = vadd.f32 %v1239_v10, %v1697_v59 }
 0x2b0   :  { %v886_v28 = vpop.f32.mrf.mxu0 }
 0x2b1   :  { %971 = vst.msk [vmem:[%s1898_s7 + $0xa8] sm:$0xff] %vm949_vm1, %v938_v20  ;;  %v943_v33 = vmul.f32 %v895_v25, %v1514_v46  ;;  %v887_v39 = vadd.f32 %v1697_v59, %v886_v28 }
 0x2b2   :  { %v1240_v41 = vpop.f32.mrf.mxu0 }
 0x2b3   :  { %976 = vst.msk [vmem:[%s1898_s7 + $0xd0] sm:$0xff] %vm949_vm1, %v943_v33  ;;  %v941_v21 = vmul.f32 %v887_v39, %v1466_v34  ;;  %v898_v16 = vadd.f32 %v1240_v41, %v1697_v59 }
 0x2b4   :  { %v889_v51 = vpop.f32.mrf.mxu0 }
 0x2b5   :  { %974 = vst.msk [vmem:[%s1898_s7 + $0xc0] sm:$0xff] %vm949_vm1, %v941_v21  ;;  %v944_v46 = vmul.f32 %v898_v16, %v1519_v47  ;;  %v890_v52 = vadd.f32 %v1697_v59, %v889_v51 }
 0x2b6   :  { %v1243_v29 = vpop.f32.mrf.mxu0 }
 0x2b7   :  { %977 = vst.msk [vmem:[%s1898_s7 + $0xd8] sm:$0xff] %vm949_vm1, %v944_v46  ;;  %v942_v34 = vmul.f32 %v890_v52, %v1471_v35  ;;  %v911_v37 = vadd.f32 %v1243_v29, %v1697_v59 }
 0x2b8   :  { %v902_v53 = vpop.f32.mrf.mxu0 }
 0x2b9   :  { %975 = vst.msk [vmem:[%s1898_s7 + $0xc8] sm:$0xff] %vm949_vm1, %v942_v34  ;;  %v947_v47 = vmul.f32 %v911_v37, %v1559_v57  ;;  %v903_v17 = vadd.f32 %v1697_v59, %v902_v53 }
 0x2ba   :  { %v1244_v61 = vpop.f32.mrf.mxu0 }
 0x2bb   :  { %980 = vst.msk [vmem:[%s1898_s7 + $0xf0] sm:$0xff] %vm949_vm1, %v947_v47  ;;  %v945_v35 = vmul.f32 %v903_v17, %v1524_v48  ;;  %v914_v60 = vadd.f32 %v1244_v61, %v1697_v59 }
 0x2bc   :  { %v905_v42 = vpop.f32.mrf.mxu0 }
 0x2bd   :  { %978 = vst.msk [vmem:[%s1898_s7 + $0xe0] sm:$0xff] %vm949_vm1, %v945_v35  ;;  %v948_v57 = vmul.f32 %v914_v60, %v1564_v58  ;;  %v906_v13 = vadd.f32 %v1697_v59, %v905_v42 }
 0x2bf   :  { %981 = vst.msk [vmem:[%s1898_s7 + $0xf8] sm:$0xff] %vm949_vm1, %v948_v57  ;;  %v946_v62 = vmul.f32 %v906_v13, %v1529_v49 }
 0x2c1   :  { %979 = vst.msk [vmem:[%s1898_s7 + $0xe8] sm:$0xff] %vm949_vm1, %v946_v62 }

</bundles_post_ra>
